<compile_context>
chip_gen: v5e
topology: v5e:2x2
jax: 0.10.0
libtpu: 0.0.40
codegen_flags: <defaults>
</compile_context>

<pallas_src>
import numpy as np
import jax
import jax.numpy as jnp
from jax.experimental import pallas as pl
from jax.experimental.pallas import tpu as pltpu


# ----------------------------------------------------------------------------
# Pallas kernel: entire LogSig-RNN recurrence in one invocation
# ----------------------------------------------------------------------------
def _make_logsigrnn_kernel(segments, batch_size, hidden_dim):
    """segments: list of (j0, j1, carry) static lag-segments with constant last_h."""
    B, H = batch_size, hidden_dim

    def kernel(logsig_ref,                      # (n_lags*B, C)   time-major rows
               w1h_ref, w1c_ref, b1_ref,        # FFN layer 1 (W1 split for the concat)
               w2_ref, b2_ref,                  # FFN layer 2
               w3_ref, b3_ref,                  # FFN layer 3
               wout_ref,                        # output linear (bias=False)
               x_ref,                           # (n_lags*B, out)
               h_all_ref):                      # VMEM scratch (n_lags*B, H)
        # Hoist all weight / bias loads once (single invocation).
        w1h = w1h_ref[...]
        w2, b2 = w2_ref[...], b2_ref[...]
        w3, b3 = w3_ref[...], b3_ref[...]

        # Input projection for EVERY lag at once: (n_lags*B, C) @ (C, H) + b1.
        pre = (jnp.dot(logsig_ref[...], w1c_ref[...],
                       preferred_element_type=jnp.float32) + b1_ref[...])

        # init_fixed=True  =>  h0 = zeros
        last_h = jnp.zeros((B, H), jnp.float32)

        # Static schedule: within a segment last_h is constant, so the segment is
        # one batched FFN pass (M = seg_len*B); only the boundary carries.
        # TODO(synk): FFN/ResFNN definitions are not given in the reference;
        #             Linear-ReLU-Linear-ReLU-Linear (+Tanh) is assumed.
        for j0, j1, carry in segments:
            seg = j1 - j0
            r0, r1 = j0 * B, j1 * B
            hh = jnp.dot(last_h, w1h, preferred_element_type=jnp.float32)   # (B, H)
            if seg > 1:
                # tile hh over the segment's timesteps (rows are t-major, b fastest)
                hh = jnp.concatenate([hh] * seg, axis=0)                    # (seg*B, H)
            h = jnp.maximum(pre[r0:r1, :] + hh, 0.0)
            h = jnp.maximum(jnp.dot(h, w2, preferred_element_type=jnp.float32) + b2, 0.0)
            h = jnp.tanh(jnp.dot(h, w3, preferred_element_type=jnp.float32) + b3)
            h_all_ref[r0:r1, :] = h
            if carry:   # "if t >= u_logsigrnn[0]: last_h = h" at the segment's last lag
                last_h = h[(seg - 1) * B:, :]

        # Output projection for every lag at once + one dense store.
        x_ref[...] = jnp.dot(h_all_ref[...], wout_ref[...],
                             preferred_element_type=jnp.float32)

    return kernel


def run_logsig_rnn(logsig_tm, params, segments, batch_size, n_lags):
    """logsig_tm: (n_lags*B, C) f32, time-major rows (t*B + b). Returns (n_lags*B, out)."""
    NB, C = logsig_tm.shape
    H = params["w2"].shape[0]
    out_dim = params["wout"].shape[1]
    kernel = _make_logsigrnn_kernel(segments, batch_size, H)

    def full(shape):
        return pl.BlockSpec(shape, lambda i: (0,) * len(shape))

    return pl.pallas_call(
        kernel,
        out_shape=jax.ShapeDtypeStruct((NB, out_dim), jnp.float32),
        grid=(1,),
        in_specs=[
            full((NB, C)),
            full((H, H)), full((C, H)), full((1, H)),
            full((H, H)), full((1, H)),
            full((H, H)), full((1, H)),
            full((H, out_dim)),
        ],
        out_specs=full((NB, out_dim)),
        scratch_shapes=[pltpu.VMEM((NB, H), jnp.float32)],
        compiler_params=pltpu.CompilerParams(dimension_semantics=("arbitrary",)),
    )(logsig_tm, params["w1h"], params["w1c"], params["b1"],
      params["w2"], params["b2"], params["w3"], params["b3"], params["wout"])


# ----------------------------------------------------------------------------
# Generator (deterministic synthetic parameters, init_fixed=True)
# ----------------------------------------------------------------------------
class LogSigRNNGeneratorPallas:
    def __init__(self, input_dim, output_dim, n_lags, depth, hidden_dim,
                 len_noise=100, len_interval_u=20, init_fixed=True, seed=0):
        assert depth == 2     # TODO(synk): signatory log-signatures of depth > 2 not implemented
        assert init_fixed     # TODO(synk): initial_nn (ResFNN) path for init_fixed=False not implemented
        # TODO(synk): apply_augmentations not provided; identity (no augmentation) assumed.
        self.input_dim = input_dim
        self.output_dim = output_dim
        self.n_lags = n_lags
        self.depth = depth
        self.hidden_dim = hidden_dim
        self.len_noise = len_noise
        self.len_interval_u = len_interval_u
        d = input_dim
        self.logsig_channels = d + d * (d - 1) // 2          # depth-2 logsig channels

        def xavier(key, shape, gain):
            fan_in, fan_out = shape
            limit = gain * np.sqrt(6.0 / (fan_in + fan_out))
            return jax.random.uniform(key, shape, jnp.float32, -limit, limit)

        gain = float(np.sqrt(2.0))                           # calculate_gain('relu')
        H, C = hidden_dim, self.logsig_channels
        k = jax.random.split(jax.random.PRNGKey(seed), 4)
        w1 = xavier(k[0], (H + C, H), gain)
        self.params = dict(
            w1h=w1[:H], w1c=w1[H:], b1=jnp.zeros((1, H), jnp.float32),
            w2=xavier(k[1], (H, H), gain), b2=jnp.zeros((1, H), jnp.float32),
            w3=xavier(k[2], (H, H), gain), b3=jnp.zeros((1, H), jnp.float32),
            wout=xavier(k[3], (H, output_dim), gain),
        )

    # ------------------------------------------------------------------ glue
    def _brownian_path(self, batch_size, key):
        d, L = self.input_dim, self.len_noise
        time_brownian = np.linspace(0.0, 1.0, L)
        z = jax.random.normal(key, (batch_size, L, d), jnp.float32)
        dt = jnp.asarray(time_brownian[1:] - time_brownian[:-1], jnp.float32)
        z = z.at[:, 1:, :].multiply(jnp.sqrt(dt)[None, :, None])
        z = z.at[:, 0, :].set(0.0)
        return jnp.cumsum(z, axis=1)                         # (B, L, d); no augmentations

    def _schedule(self, n_lags):
        """Static host-side index schedule, last_h-update mask and segments."""
        time_brownian = np.linspace(0.0, 1.0, self.len_noise)
        time_u = time_brownian[::self.len_interval_u]
        time_t = np.linspace(0.0, 1.0, n_lags)
        ind_low, ind_max, u_logsigrnn = [], [], []
        last_u = -1.0
        for t in time_t[1:]:
            u = time_u[time_u < t].max()
            if u != last_u:
                u_logsigrnn.append(float(u))
                last_u = u
            ind_low.append(int(np.nonzero(time_brownian <= u)[0].max()))
            ind_max.append(int(np.nonzero(time_brownian <= t)[0].max()))
        u_logsigrnn.append(float(time_t[-1]))

        mask, uq = [], list(u_logsigrnn)                     # pop-based, as in the PyTorch loop
        for t in time_t:
            if len(uq) > 0 and t >= uq[0]:
                del uq[0]
                mask.append(1)
            else:
                mask.append(0)

        segments, start = [], 0
        for j in range(n_lags):
            if mask[j] == 1:
                segments.append((start, j + 1, True))
                start = j + 1
        if start < n_lags:
            segments.append((start, n_lags, False))
        return np.asarray(ind_low), np.asarray(ind_max), mask, segments

    def _multilevel_logsig(self, y, ind_low, ind_max):
        """Depth-2 log-signatures (basepoint 0) of all lag windows, vectorized via a
        cumulative outer-product prefix sum (replaces the per-lag host loop)."""
        B, L, d = y.shape
        dy = y[:, 1:, :] - y[:, :-1, :]
        outer = y[:, :-1, :, None] * dy[:, :, None, :]                  # (B, L-1, d, d)
        S = jnp.concatenate(
            [jnp.zeros((B, 1, d, d), jnp.float32), jnp.cumsum(outer, axis=1)], axis=1)
        M = S[:, ind_max, :, :] - S[:, ind_low, :, :]                   # (B, n_lags-1, d, d)
        A = 0.5 * (M - jnp.swapaxes(M, -1, -2))                         # Levy areas
        iu, ju = np.triu_indices(d, k=1)                                # Lyndon words "ij", i<j
        lvl1 = y[:, ind_max, :]                                         # total increment from basepoint 0
        lvl2 = A[:, :, iu, ju]
        logsig = jnp.concatenate([lvl1, lvl2], axis=-1)                 # (B, n_lags-1, C)
        zero0 = jnp.zeros((B, 1, self.logsig_channels), jnp.float32)
        return jnp.concatenate([zero0, logsig], axis=1)                 # (B, n_lags, C)

    # --------------------------------------------------------------- forward
    def forward(self, batch_size, n_lags, key):
        y = self._brownian_path(batch_size, key)
        ind_low, ind_max, _mask, segments = self._schedule(n_lags)
        logsig = self._multilevel_logsig(y, ind_low, ind_max)           # (B, n_lags, C)
        # time-major flatten for the kernel (row = t*B + b)
        logsig_tm = jnp.transpose(logsig, (1, 0, 2)).reshape(
            n_lags * batch_size, self.logsig_channels)
        x_tm = run_logsig_rnn(logsig_tm, self.params, segments, batch_size, n_lags)
        x = jnp.transpose(
            x_tm.reshape(n_lags, batch_size, self.output_dim), (1, 0, 2))
        assert x.shape[1] == n_lags
        return x

    # --------------------------------------------- pure-JAX reference (check)
    def forward_reference(self, batch_size, n_lags, key):
        """Per-lag loop mirroring the PyTorch module, for validation only."""
        hp = jax.lax.Precision.HIGHEST
        d = self.input_dim
        y = self._brownian_path(batch_size, key)
        ind_low, ind_max, mask, _segments = self._schedule(n_lags)
        iu, ju = np.triu_indices(d, k=1)
        logsigs = [jnp.zeros((batch_size, self.logsig_channels), jnp.float32)]
        for a, b in zip(ind_low, ind_max):
            seg = y[:, a:b + 1, :]
            aug = jnp.concatenate(
                [jnp.zeros((batch_size, 1, d), jnp.float32), seg], axis=1)
            inc = aug[:, 1:, :] - aug[:, :-1, :]
            M = jnp.einsum('bti,btj->bij', aug[:, :-1, :], inc, precision=hp)
            A = 0.5 * (M - jnp.swapaxes(M, 1, 2))
            logsigs.append(jnp.concatenate([aug[:, -1, :], A[:, iu, ju]], axis=-1))
        p = self.params
        w1 = jnp.concatenate([p["w1h"], p["w1c"]], axis=0)
        last_h = jnp.zeros((batch_size, self.hidden_dim), jnp.float32)
        xs = []
        for idx in range(n_lags):
            inp = jnp.concatenate([last_h, logsigs[idx]], axis=-1)
            h = jnp.maximum(jnp.dot(inp, w1, precision=hp) + p["b1"], 0.0)
            h = jnp.maximum(jnp.dot(h, p["w2"], precision=hp) + p["b2"], 0.0)
            h = jnp.tanh(jnp.dot(h, p["w3"], precision=hp) + p["b3"])
            if mask[idx] == 1:
                last_h = h
            xs.append(jnp.dot(h, p["wout"], precision=hp))
        return jnp.stack(xs, axis=1)                                    # (B, n_lags, out)


if __name__ == "__main__":
    key = jax.random.PRNGKey(0)
    batch_size, n_lags = 2, 8
    gen = LogSigRNNGeneratorPallas(
        input_dim=4, output_dim=4, n_lags=n_lags, depth=2, hidden_dim=32,
        len_noise=100, len_interval_u=20, init_fixed=True, seed=0)

    x = gen.forward(batch_size=batch_size, n_lags=n_lags, key=key)
    x = jax.block_until_ready(x)
    assert x.shape == (batch_size, n_lags, 4)
    assert bool(jnp.all(jnp.isfinite(x)))

    # Pure-JAX reference (per-lag loop, per-window log-signatures) sanity check.
    x_ref = jax.block_until_ready(
        gen.forward_reference(batch_size=batch_size, n_lags=n_lags, key=key))
    assert jnp.allclose(x, x_ref, rtol=2e-2, atol=2e-2), \
        float(jnp.max(jnp.abs(x - x_ref)))

    print("KERNEL_OK")
</pallas_src>

<mosaic_0001>
module attributes {stable_mosaic.version = 11 : i64} {
  func.func @kernel(%arg0: i32, %arg1: memref<16x10xf32, #tpu.memory_space<vmem>>, %arg2: memref<32x32xf32, #tpu.memory_space<vmem>>, %arg3: memref<10x32xf32, #tpu.memory_space<vmem>>, %arg4: memref<1x32xf32, #tpu.memory_space<vmem>>, %arg5: memref<32x32xf32, #tpu.memory_space<vmem>>, %arg6: memref<1x32xf32, #tpu.memory_space<vmem>>, %arg7: memref<32x32xf32, #tpu.memory_space<vmem>>, %arg8: memref<1x32xf32, #tpu.memory_space<vmem>>, %arg9: memref<32x4xf32, #tpu.memory_space<vmem>>, %arg10: memref<16x4xf32, #tpu.memory_space<vmem>>, %arg11: memref<16x32xf32, #tpu.memory_space<vmem>>) attributes {dimension_semantics = [#tpu.dimension_semantics<arbitrary>], iteration_bounds = array<i64: 1>, scalar_prefetch = 0 : i64, scratch_operands = 1 : i64, tpu.core_type = #tpu.core_type<tc>, window_params = [{pipeline_mode = #tpu.pipeline_mode<synchronous>, transform_indices = @transform_0, window_bounds = array<i64: 16, 10>}, {pipeline_mode = #tpu.pipeline_mode<synchronous>, transform_indices = @transform_1, window_bounds = array<i64: 32, 32>}, {pipeline_mode = #tpu.pipeline_mode<synchronous>, transform_indices = @transform_2, window_bounds = array<i64: 10, 32>}, {pipeline_mode = #tpu.pipeline_mode<synchronous>, transform_indices = @transform_3, window_bounds = array<i64: 1, 32>}, {pipeline_mode = #tpu.pipeline_mode<synchronous>, transform_indices = @transform_4, window_bounds = array<i64: 32, 32>}, {pipeline_mode = #tpu.pipeline_mode<synchronous>, transform_indices = @transform_5, window_bounds = array<i64: 1, 32>}, {pipeline_mode = #tpu.pipeline_mode<synchronous>, transform_indices = @transform_6, window_bounds = array<i64: 32, 32>}, {pipeline_mode = #tpu.pipeline_mode<synchronous>, transform_indices = @transform_7, window_bounds = array<i64: 1, 32>}, {pipeline_mode = #tpu.pipeline_mode<synchronous>, transform_indices = @transform_8, window_bounds = array<i64: 32, 4>}, {pipeline_mode = #tpu.pipeline_mode<synchronous>, transform_indices = @transform_9, window_bounds = array<i64: 16, 4>}]} {
    %c0 = arith.constant 0 : index
    %c0_0 = arith.constant 0 : index
    %0 = vector.load %arg2[%c0, %c0_0] : memref<32x32xf32, #tpu.memory_space<vmem>>, vector<32x32xf32>
    %c0_1 = arith.constant 0 : index
    %c0_2 = arith.constant 0 : index
    %1 = vector.load %arg5[%c0_1, %c0_2] : memref<32x32xf32, #tpu.memory_space<vmem>>, vector<32x32xf32>
    %c0_3 = arith.constant 0 : index
    %c0_4 = arith.constant 0 : index
    %2 = vector.load %arg6[%c0_3, %c0_4] : memref<1x32xf32, #tpu.memory_space<vmem>>, vector<1x32xf32>
    %c0_5 = arith.constant 0 : index
    %c0_6 = arith.constant 0 : index
    %3 = vector.load %arg7[%c0_5, %c0_6] : memref<32x32xf32, #tpu.memory_space<vmem>>, vector<32x32xf32>
    %c0_7 = arith.constant 0 : index
    %c0_8 = arith.constant 0 : index
    %4 = vector.load %arg8[%c0_7, %c0_8] : memref<1x32xf32, #tpu.memory_space<vmem>>, vector<1x32xf32>
    %c0_9 = arith.constant 0 : index
    %c0_10 = arith.constant 0 : index
    %5 = vector.load %arg1[%c0_9, %c0_10] : memref<16x10xf32, #tpu.memory_space<vmem>>, vector<16x10xf32>
    %c0_11 = arith.constant 0 : index
    %c0_12 = arith.constant 0 : index
    %6 = vector.load %arg3[%c0_11, %c0_12] : memref<10x32xf32, #tpu.memory_space<vmem>>, vector<10x32xf32>
    %cst = arith.constant dense<0.000000e+00> : vector<16x32xf32>
    %7 = tpu.matmul %5, %6, %cst {dimension_numbers = #tpu.dot_dimension_numbers<[1], [0], [0], [1], [0, 0, 1, 1], [], []>} : vector<16x10xf32>, vector<10x32xf32>, vector<16x32xf32> -> vector<16x32xf32>
    %c0_13 = arith.constant 0 : index
    %c0_14 = arith.constant 0 : index
    %8 = vector.load %arg4[%c0_13, %c0_14] : memref<1x32xf32, #tpu.memory_space<vmem>>, vector<1x32xf32>
    %9 = vector.broadcast %8 : vector<1x32xf32> to vector<16x32xf32>
    %10 = arith.addf %7, %9 : vector<16x32xf32>
    %cst_15 = arith.constant 0.000000e+00 : f32
    %11 = vector.broadcast %cst_15 : f32 to vector<2x32xf32>
    %cst_16 = arith.constant dense<0.000000e+00> : vector<2x32xf32>
    %12 = tpu.matmul %11, %0, %cst_16 {dimension_numbers = #tpu.dot_dimension_numbers<[1], [0], [0], [1], [0, 0, 1, 1], [], []>} : vector<2x32xf32>, vector<32x32xf32>, vector<2x32xf32> -> vector<2x32xf32>
    %13 = vector.extract_strided_slice %10 {offsets = [0, 0], sizes = [2, 32], strides = [1, 1]} : vector<16x32xf32> to vector<2x32xf32>
    %14 = arith.addf %13, %12 : vector<2x32xf32>
    %cst_17 = arith.constant 0.000000e+00 : f32
    %15 = vector.broadcast %cst_17 : f32 to vector<2x32xf32>
    %16 = arith.maximumf %14, %15 : vector<2x32xf32>
    %cst_18 = arith.constant dense<0.000000e+00> : vector<2x32xf32>
    %17 = tpu.matmul %16, %1, %cst_18 {dimension_numbers = #tpu.dot_dimension_numbers<[1], [0], [0], [1], [0, 0, 1, 1], [], []>} : vector<2x32xf32>, vector<32x32xf32>, vector<2x32xf32> -> vector<2x32xf32>
    %18 = vector.broadcast %2 : vector<1x32xf32> to vector<2x32xf32>
    %19 = arith.addf %17, %18 : vector<2x32xf32>
    %cst_19 = arith.constant 0.000000e+00 : f32
    %20 = vector.broadcast %cst_19 : f32 to vector<2x32xf32>
    %21 = arith.maximumf %19, %20 : vector<2x32xf32>
    %cst_20 = arith.constant dense<0.000000e+00> : vector<2x32xf32>
    %22 = tpu.matmul %21, %3, %cst_20 {dimension_numbers = #tpu.dot_dimension_numbers<[1], [0], [0], [1], [0, 0, 1, 1], [], []>} : vector<2x32xf32>, vector<32x32xf32>, vector<2x32xf32> -> vector<2x32xf32>
    %23 = vector.broadcast %4 : vector<1x32xf32> to vector<2x32xf32>
    %24 = arith.addf %22, %23 : vector<2x32xf32>
    %25 = math.tanh %24 : vector<2x32xf32>
    %c0_21 = arith.constant 0 : index
    %c0_22 = arith.constant 0 : index
    %26 = vector.load %arg11[%c0_21, %c0_22] : memref<16x32xf32, #tpu.memory_space<vmem>>, vector<2x32xf32>
    tpu.vector_store %arg11[%c0_21, %c0_22], %25 {strides = array<i32>} : memref<16x32xf32, #tpu.memory_space<vmem>>, vector<2x32xf32>,
    %cst_23 = arith.constant dense<0.000000e+00> : vector<2x32xf32>
    %27 = tpu.matmul %25, %0, %cst_23 {dimension_numbers = #tpu.dot_dimension_numbers<[1], [0], [0], [1], [0, 0, 1, 1], [], []>} : vector<2x32xf32>, vector<32x32xf32>, vector<2x32xf32> -> vector<2x32xf32>
    %28 = tpu.concatenate %27, %27 in 0 : vector<2x32xf32>, vector<2x32xf32> -> vector<4x32xf32>
    %29 = vector.extract_strided_slice %10 {offsets = [2, 0], sizes = [4, 32], strides = [1, 1]} : vector<16x32xf32> to vector<4x32xf32>
    %30 = arith.addf %29, %28 : vector<4x32xf32>
    %cst_24 = arith.constant 0.000000e+00 : f32
    %31 = vector.broadcast %cst_24 : f32 to vector<4x32xf32>
    %32 = arith.maximumf %30, %31 : vector<4x32xf32>
    %cst_25 = arith.constant dense<0.000000e+00> : vector<4x32xf32>
    %33 = tpu.matmul %32, %1, %cst_25 {dimension_numbers = #tpu.dot_dimension_numbers<[1], [0], [0], [1], [0, 0, 1, 1], [], []>} : vector<4x32xf32>, vector<32x32xf32>, vector<4x32xf32> -> vector<4x32xf32>
    %34 = vector.broadcast %2 : vector<1x32xf32> to vector<4x32xf32>
    %35 = arith.addf %33, %34 : vector<4x32xf32>
    %cst_26 = arith.constant 0.000000e+00 : f32
    %36 = vector.broadcast %cst_26 : f32 to vector<4x32xf32>
    %37 = arith.maximumf %35, %36 : vector<4x32xf32>
    %cst_27 = arith.constant dense<0.000000e+00> : vector<4x32xf32>
    %38 = tpu.matmul %37, %3, %cst_27 {dimension_numbers = #tpu.dot_dimension_numbers<[1], [0], [0], [1], [0, 0, 1, 1], [], []>} : vector<4x32xf32>, vector<32x32xf32>, vector<4x32xf32> -> vector<4x32xf32>
    %39 = vector.broadcast %4 : vector<1x32xf32> to vector<4x32xf32>
    %40 = arith.addf %38, %39 : vector<4x32xf32>
    %41 = math.tanh %40 : vector<4x32xf32>
    %c2 = arith.constant 2 : index
    %c0_28 = arith.constant 0 : index
    %42 = vector.load %arg11[%c2, %c0_28] : memref<16x32xf32, #tpu.memory_space<vmem>>, vector<4x32xf32>
    tpu.vector_store %arg11[%c2, %c0_28], %41 {strides = array<i32>} : memref<16x32xf32, #tpu.memory_space<vmem>>, vector<4x32xf32>,
    %43 = vector.extract_strided_slice %41 {offsets = [2, 0], sizes = [2, 32], strides = [1, 1]} : vector<4x32xf32> to vector<2x32xf32>
    %cst_29 = arith.constant dense<0.000000e+00> : vector<2x32xf32>
    %44 = tpu.matmul %43, %0, %cst_29 {dimension_numbers = #tpu.dot_dimension_numbers<[1], [0], [0], [1], [0, 0, 1, 1], [], []>} : vector<2x32xf32>, vector<32x32xf32>, vector<2x32xf32> -> vector<2x32xf32>
    %45 = vector.extract_strided_slice %10 {offsets = [6, 0], sizes = [2, 32], strides = [1, 1]} : vector<16x32xf32> to vector<2x32xf32>
    %46 = arith.addf %45, %44 : vector<2x32xf32>
    %cst_30 = arith.constant 0.000000e+00 : f32
    %47 = vector.broadcast %cst_30 : f32 to vector<2x32xf32>
    %48 = arith.maximumf %46, %47 : vector<2x32xf32>
    %cst_31 = arith.constant dense<0.000000e+00> : vector<2x32xf32>
    %49 = tpu.matmul %48, %1, %cst_31 {dimension_numbers = #tpu.dot_dimension_numbers<[1], [0], [0], [1], [0, 0, 1, 1], [], []>} : vector<2x32xf32>, vector<32x32xf32>, vector<2x32xf32> -> vector<2x32xf32>
    %50 = vector.broadcast %2 : vector<1x32xf32> to vector<2x32xf32>
    %51 = arith.addf %49, %50 : vector<2x32xf32>
    %cst_32 = arith.constant 0.000000e+00 : f32
    %52 = vector.broadcast %cst_32 : f32 to vector<2x32xf32>
    %53 = arith.maximumf %51, %52 : vector<2x32xf32>
    %cst_33 = arith.constant dense<0.000000e+00> : vector<2x32xf32>
    %54 = tpu.matmul %53, %3, %cst_33 {dimension_numbers = #tpu.dot_dimension_numbers<[1], [0], [0], [1], [0, 0, 1, 1], [], []>} : vector<2x32xf32>, vector<32x32xf32>, vector<2x32xf32> -> vector<2x32xf32>
    %55 = vector.broadcast %4 : vector<1x32xf32> to vector<2x32xf32>
    %56 = arith.addf %54, %55 : vector<2x32xf32>
    %57 = math.tanh %56 : vector<2x32xf32>
    %c6 = arith.constant 6 : index
    %c0_34 = arith.constant 0 : index
    %58 = vector.load %arg11[%c6, %c0_34] : memref<16x32xf32, #tpu.memory_space<vmem>>, vector<2x32xf32>
    tpu.vector_store %arg11[%c6, %c0_34], %57 {strides = array<i32>} : memref<16x32xf32, #tpu.memory_space<vmem>>, vector<2x32xf32>,
    %cst_35 = arith.constant dense<0.000000e+00> : vector<2x32xf32>
    %59 = tpu.matmul %57, %0, %cst_35 {dimension_numbers = #tpu.dot_dimension_numbers<[1], [0], [0], [1], [0, 0, 1, 1], [], []>} : vector<2x32xf32>, vector<32x32xf32>, vector<2x32xf32> -> vector<2x32xf32>
    %60 = tpu.concatenate %59, %59 in 0 : vector<2x32xf32>, vector<2x32xf32> -> vector<4x32xf32>
    %61 = vector.extract_strided_slice %10 {offsets = [8, 0], sizes = [4, 32], strides = [1, 1]} : vector<16x32xf32> to vector<4x32xf32>
    %62 = arith.addf %61, %60 : vector<4x32xf32>
    %cst_36 = arith.constant 0.000000e+00 : f32
    %63 = vector.broadcast %cst_36 : f32 to vector<4x32xf32>
    %64 = arith.maximumf %62, %63 : vector<4x32xf32>
    %cst_37 = arith.constant dense<0.000000e+00> : vector<4x32xf32>
    %65 = tpu.matmul %64, %1, %cst_37 {dimension_numbers = #tpu.dot_dimension_numbers<[1], [0], [0], [1], [0, 0, 1, 1], [], []>} : vector<4x32xf32>, vector<32x32xf32>, vector<4x32xf32> -> vector<4x32xf32>
    %66 = vector.broadcast %2 : vector<1x32xf32> to vector<4x32xf32>
    %67 = arith.addf %65, %66 : vector<4x32xf32>
    %cst_38 = arith.constant 0.000000e+00 : f32
    %68 = vector.broadcast %cst_38 : f32 to vector<4x32xf32>
    %69 = arith.maximumf %67, %68 : vector<4x32xf32>
    %cst_39 = arith.constant dense<0.000000e+00> : vector<4x32xf32>
    %70 = tpu.matmul %69, %3, %cst_39 {dimension_numbers = #tpu.dot_dimension_numbers<[1], [0], [0], [1], [0, 0, 1, 1], [], []>} : vector<4x32xf32>, vector<32x32xf32>, vector<4x32xf32> -> vector<4x32xf32>
    %71 = vector.broadcast %4 : vector<1x32xf32> to vector<4x32xf32>
    %72 = arith.addf %70, %71 : vector<4x32xf32>
    %73 = math.tanh %72 : vector<4x32xf32>
    %c8 = arith.constant 8 : index
    %c0_40 = arith.constant 0 : index
    %74 = vector.load %arg11[%c8, %c0_40] : memref<16x32xf32, #tpu.memory_space<vmem>>, vector<4x32xf32>
    tpu.vector_store %arg11[%c8, %c0_40], %73 {strides = array<i32>} : memref<16x32xf32, #tpu.memory_space<vmem>>, vector<4x32xf32>,
    %75 = vector.extract_strided_slice %73 {offsets = [2, 0], sizes = [2, 32], strides = [1, 1]} : vector<4x32xf32> to vector<2x32xf32>
    %cst_41 = arith.constant dense<0.000000e+00> : vector<2x32xf32>
    %76 = tpu.matmul %75, %0, %cst_41 {dimension_numbers = #tpu.dot_dimension_numbers<[1], [0], [0], [1], [0, 0, 1, 1], [], []>} : vector<2x32xf32>, vector<32x32xf32>, vector<2x32xf32> -> vector<2x32xf32>
    %77 = vector.extract_strided_slice %10 {offsets = [12, 0], sizes = [2, 32], strides = [1, 1]} : vector<16x32xf32> to vector<2x32xf32>
    %78 = arith.addf %77, %76 : vector<2x32xf32>
    %cst_42 = arith.constant 0.000000e+00 : f32
    %79 = vector.broadcast %cst_42 : f32 to vector<2x32xf32>
    %80 = arith.maximumf %78, %79 : vector<2x32xf32>
    %cst_43 = arith.constant dense<0.000000e+00> : vector<2x32xf32>
    %81 = tpu.matmul %80, %1, %cst_43 {dimension_numbers = #tpu.dot_dimension_numbers<[1], [0], [0], [1], [0, 0, 1, 1], [], []>} : vector<2x32xf32>, vector<32x32xf32>, vector<2x32xf32> -> vector<2x32xf32>
    %82 = vector.broadcast %2 : vector<1x32xf32> to vector<2x32xf32>
    %83 = arith.addf %81, %82 : vector<2x32xf32>
    %cst_44 = arith.constant 0.000000e+00 : f32
    %84 = vector.broadcast %cst_44 : f32 to vector<2x32xf32>
    %85 = arith.maximumf %83, %84 : vector<2x32xf32>
    %cst_45 = arith.constant dense<0.000000e+00> : vector<2x32xf32>
    %86 = tpu.matmul %85, %3, %cst_45 {dimension_numbers = #tpu.dot_dimension_numbers<[1], [0], [0], [1], [0, 0, 1, 1], [], []>} : vector<2x32xf32>, vector<32x32xf32>, vector<2x32xf32> -> vector<2x32xf32>
    %87 = vector.broadcast %4 : vector<1x32xf32> to vector<2x32xf32>
    %88 = arith.addf %86, %87 : vector<2x32xf32>
    %89 = math.tanh %88 : vector<2x32xf32>
    %c12 = arith.constant 12 : index
    %c0_46 = arith.constant 0 : index
    %90 = vector.load %arg11[%c12, %c0_46] : memref<16x32xf32, #tpu.memory_space<vmem>>, vector<2x32xf32>
    tpu.vector_store %arg11[%c12, %c0_46], %89 {strides = array<i32>} : memref<16x32xf32, #tpu.memory_space<vmem>>, vector<2x32xf32>,
    %cst_47 = arith.constant dense<0.000000e+00> : vector<2x32xf32>
    %91 = tpu.matmul %89, %0, %cst_47 {dimension_numbers = #tpu.dot_dimension_numbers<[1], [0], [0], [1], [0, 0, 1, 1], [], []>} : vector<2x32xf32>, vector<32x32xf32>, vector<2x32xf32> -> vector<2x32xf32>
    %92 = vector.extract_strided_slice %10 {offsets = [14, 0], sizes = [2, 32], strides = [1, 1]} : vector<16x32xf32> to vector<2x32xf32>
    %93 = arith.addf %92, %91 : vector<2x32xf32>
    %cst_48 = arith.constant 0.000000e+00 : f32
    %94 = vector.broadcast %cst_48 : f32 to vector<2x32xf32>
    %95 = arith.maximumf %93, %94 : vector<2x32xf32>
    %cst_49 = arith.constant dense<0.000000e+00> : vector<2x32xf32>
    %96 = tpu.matmul %95, %1, %cst_49 {dimension_numbers = #tpu.dot_dimension_numbers<[1], [0], [0], [1], [0, 0, 1, 1], [], []>} : vector<2x32xf32>, vector<32x32xf32>, vector<2x32xf32> -> vector<2x32xf32>
    %97 = vector.broadcast %2 : vector<1x32xf32> to vector<2x32xf32>
    %98 = arith.addf %96, %97 : vector<2x32xf32>
    %cst_50 = arith.constant 0.000000e+00 : f32
    %99 = vector.broadcast %cst_50 : f32 to vector<2x32xf32>
    %100 = arith.maximumf %98, %99 : vector<2x32xf32>
    %cst_51 = arith.constant dense<0.000000e+00> : vector<2x32xf32>
    %101 = tpu.matmul %100, %3, %cst_51 {dimension_numbers = #tpu.dot_dimension_numbers<[1], [0], [0], [1], [0, 0, 1, 1], [], []>} : vector<2x32xf32>, vector<32x32xf32>, vector<2x32xf32> -> vector<2x32xf32>
    %102 = vector.broadcast %4 : vector<1x32xf32> to vector<2x32xf32>
    %103 = arith.addf %101, %102 : vector<2x32xf32>
    %104 = math.tanh %103 : vector<2x32xf32>
    %c14 = arith.constant 14 : index
    %c0_52 = arith.constant 0 : index
    %105 = vector.load %arg11[%c14, %c0_52] : memref<16x32xf32, #tpu.memory_space<vmem>>, vector<2x32xf32>
    tpu.vector_store %arg11[%c14, %c0_52], %104 {strides = array<i32>} : memref<16x32xf32, #tpu.memory_space<vmem>>, vector<2x32xf32>,
    %c0_53 = arith.constant 0 : index
    %c0_54 = arith.constant 0 : index
    %106 = vector.load %arg11[%c0_53, %c0_54] : memref<16x32xf32, #tpu.memory_space<vmem>>, vector<16x32xf32>
    %c0_55 = arith.constant 0 : index
    %c0_56 = arith.constant 0 : index
    %107 = vector.load %arg9[%c0_55, %c0_56] : memref<32x4xf32, #tpu.memory_space<vmem>>, vector<32x4xf32>
    %cst_57 = arith.constant dense<0.000000e+00> : vector<16x4xf32>
    %108 = tpu.matmul %106, %107, %cst_57 {dimension_numbers = #tpu.dot_dimension_numbers<[1], [0], [0], [1], [0, 0, 1, 1], [], []>} : vector<16x32xf32>, vector<32x4xf32>, vector<16x4xf32> -> vector<16x4xf32>
    %c0_58 = arith.constant 0 : index
    %c0_59 = arith.constant 0 : index
    %109 = vector.load %arg10[%c0_58, %c0_59] : memref<16x4xf32, #tpu.memory_space<vmem>>, vector<16x4xf32>
    tpu.vector_store %arg10[%c0_58, %c0_59], %108 {strides = array<i32>} : memref<16x4xf32, #tpu.memory_space<vmem>>, vector<16x4xf32>,
    return
  }
  func.func @transform_0(%arg0: i32) -> (i32, i32) {
    %c0_i32 = arith.constant 0 : i32
    %c0_i32_0 = arith.constant 0 : i32
    %c0_i32_1 = arith.constant 0 : i32
    return %c0_i32, %c0_i32_0 : i32, i32
  }
  func.func @transform_1(%arg0: i32) -> (i32, i32) {
    %c0_i32 = arith.constant 0 : i32
    %c0_i32_0 = arith.constant 0 : i32
    %c0_i32_1 = arith.constant 0 : i32
    return %c0_i32, %c0_i32_0 : i32, i32
  }
  func.func @transform_2(%arg0: i32) -> (i32, i32) {
    %c0_i32 = arith.constant 0 : i32
    %c0_i32_0 = arith.constant 0 : i32
    %c0_i32_1 = arith.constant 0 : i32
    return %c0_i32, %c0_i32_0 : i32, i32
  }
  func.func @transform_3(%arg0: i32) -> (i32, i32) {
    %c0_i32 = arith.constant 0 : i32
    %c0_i32_0 = arith.constant 0 : i32
    %c0_i32_1 = arith.constant 0 : i32
    return %c0_i32, %c0_i32_0 : i32, i32
  }
  func.func @transform_4(%arg0: i32) -> (i32, i32) {
    %c0_i32 = arith.constant 0 : i32
    %c0_i32_0 = arith.constant 0 : i32
    %c0_i32_1 = arith.constant 0 : i32
    return %c0_i32, %c0_i32_0 : i32, i32
  }
  func.func @transform_5(%arg0: i32) -> (i32, i32) {
    %c0_i32 = arith.constant 0 : i32
    %c0_i32_0 = arith.constant 0 : i32
    %c0_i32_1 = arith.constant 0 : i32
    return %c0_i32, %c0_i32_0 : i32, i32
  }
  func.func @transform_6(%arg0: i32) -> (i32, i32) {
    %c0_i32 = arith.constant 0 : i32
    %c0_i32_0 = arith.constant 0 : i32
    %c0_i32_1 = arith.constant 0 : i32
    return %c0_i32, %c0_i32_0 : i32, i32
  }
  func.func @transform_7(%arg0: i32) -> (i32, i32) {
    %c0_i32 = arith.constant 0 : i32
    %c0_i32_0 = arith.constant 0 : i32
    %c0_i32_1 = arith.constant 0 : i32
    return %c0_i32, %c0_i32_0 : i32, i32
  }
  func.func @transform_8(%arg0: i32) -> (i32, i32) {
    %c0_i32 = arith.constant 0 : i32
    %c0_i32_0 = arith.constant 0 : i32
    %c0_i32_1 = arith.constant 0 : i32
    return %c0_i32, %c0_i32_0 : i32, i32
  }
  func.func @transform_9(%arg0: i32) -> (i32, i32) {
    %c0_i32 = arith.constant 0 : i32
    %c0_i32_0 = arith.constant 0 : i32
    %c0_i32_1 = arith.constant 0 : i32
    return %c0_i32, %c0_i32_0 : i32, i32
  }
}

</mosaic_0001>

<bundles_post_ra>
// kernel: tpu_custom_call.1
= control target key start
LH: loop header
LB: loop body
LE: loop exit
PB: predicated region body
PF: predicated region fallthrough
CT: control target
= control target key end

     0   :  { %14 = vsyncpa [#allocation4], 0  ;;  %s1084_s0 = inlined_call_operand.hbm [shape: f32[16,10], index: 0, kind: input, shape index: {}]   ;;  %s1085_s1 = inlined_call_operand.vmem [shape: f32[32,32], index: 1, kind: input, shape index: {}]   ;;  %s1086_s2 = inlined_call_operand.hbm [shape: f32[10,32], index: 2, kind: input, shape index: {}]   ;;  %s1087_s3 = inlined_call_operand.vmem [shape: f32[1,32], index: 3, kind: input, shape index: {}]   ;;  %s1088_s4 = inlined_call_operand.hbm [shape: f32[32,32], index: 4, kind: input, shape index: {}]   ;;  %s1089_s5 = inlined_call_operand.vmem [shape: f32[1,32], index: 5, kind: input, shape index: {}]   ;;  %s1090_s6 = inlined_call_operand.hbm [shape: f32[32,32], index: 6, kind: input, shape index: {}]   ;;  %s1091_s7 = inlined_call_operand.vmem [shape: f32[1,32], index: 7, kind: input, shape index: {}]   ;;  %s1092_s8 = inlined_call_operand.vmem [shape: f32[32,4], index: 8, kind: input, shape index: {}]   ;;  %s1093_s9 = inlined_call_operand.vmem [shape: f32[16,4], index: 9, kind: output, shape index: {}]  }
   0x1   :  { %15 = vsyncpa [#allocation6], 0 }
   0x2   :  { %16 = vsyncpa [#allocation9], 0  ;;  %s36_s11 = sshll.u32 %s1086_s2, 4  ;;  %s823_s12 = smov [#allocation5]   ;;  %s37_s11 = int_to_ptr.hbm [resolvable:$true] %s36_s11 }
   0x3   :  { %s38_s13 = sshll.u32 %s823_s12, 4  ;;  %s21_s16 = sshll.u32 %s1084_s0, 4  ;;  %s39_s13 = int_to_ptr.vmem [resolvable:$true] %s38_s13  ;;  %s22_s16 = int_to_ptr.hbm [resolvable:$true] %s21_s16 }
   0x4   :  { %s824_s17 = smov 128   ;;  %s825_s18 = smov 8  }
   0x5   :  { %44 = dma.hbm_to_vmem [thread:$0]  %s37_s11, 256, %s39_s13, [#allocation6], %s824_s17, %s824_s17, %s825_s18  }
   0x6   :  { %s826_s19 = smov [#allocation3]   ;;  %s51_s23 = sshll.u32 %s1088_s4, 4  ;;  %s52_s23 = int_to_ptr.hbm [resolvable:$true] %s51_s23 }
   0x7   :  { %s23_s20 = sshll.u32 %s826_s19, 4  ;;  %s66_s25 = sshll.u32 %s1090_s6, 4  ;;  %s24_s20 = int_to_ptr.vmem [resolvable:$true] %s23_s20  ;;  %s67_s25 = int_to_ptr.hbm [resolvable:$true] %s66_s25 }
   0x8   :  { %29 = dma.hbm_to_vmem [thread:$0]  %s22_s16, 256, %s24_s20, [#allocation4], %s824_s17, %s824_s17, %s825_s18  }
   0x9   :  { %s827_s26 = smov [#allocation7]   ;;  %s828_s0 = smov [#allocation8]  }
   0xa   :  { %s53_s27 = sshll.u32 %s827_s26, 4  ;;  %s68_s28 = sshll.u32 %s828_s0, 4  ;;  %s54_s27 = int_to_ptr.vmem [resolvable:$true] %s53_s27  ;;  %s69_s28 = int_to_ptr.vmem [resolvable:$true] %s68_s28 }
   0xb   :  { %59 = dma.hbm_to_vmem [thread:$0]  %s52_s23, 512, %s54_s27, [#allocation6], %s824_s17, %s824_s17, %s825_s18  }
   0xc   :  { %74 = dma.hbm_to_vmem [thread:$0]  %s67_s25, 512, %s69_s28, [#allocation9], %s824_s17, %s824_s17, %s825_s18  }
   0xd   :  { %817 = dma.done.wait [#allocation4], 256  }
   0xe   :  { %818 = vsyncadd [#allocation4], 4294967040 }
   0xf   :  { %819 = dma.done.wait [#allocation6], 768  }
  0x10   :  { %820 = vsyncadd [#allocation6], 4294966528 }
  0x11   :  { %821 = dma.done.wait [#allocation9], 512  }
  0x12   :  { %822 = vsyncadd [#allocation9], 4294966784  ;;  %vm124_vm0 = vcmask 1041408   ;;  %v112_v0 = vld [vmem:[#allocation5 + $0x8] sm:$0x3]  ;;  %v111_v1 = vld [vmem:[#allocation5] sm:$0xff] }
  0x13   :  { %697 = vmatpush.msk.msra.mxu1 %vm124_vm0, %v112_v0  ;;  %v110_v2 = vld [vmem:[#allocation3 + $0x8] sm:$0xff]  ;;  %vm117_vm1 = vcmask 80896   ;;  %675 = vmatpush.msk.msra.mxu0 %vm124_vm0, %v112_v0  ;;  %v109_v4 = vld [vmem:[#allocation3] sm:$0xff]  ;;  %v909_v6 = vld [vmem:[%s1085_s1 + $0x8] sm:$0xff]  ;;  %v829_v8 = vmov 0.0   ;;  %vm151_vm2 = vcmask 261120  }
  0x14   :  { %v897_v3 = vld [vmem:[%s1085_s1 + $0x18] sm:$0xff]  ;;  %v902_v5 = vld [vmem:[%s1085_s1 + $0x10] sm:$0xff]  ;;  %v916_v7 = vld [vmem:[%s1085_s1] sm:$0xff]  ;;  %vm231_vm3 = vcmask 254976   ;;  %vm314_vm4 = vcmask 257024   ;;  %vm665_vm5 = vcmask 31744  }
  0x15   :  { %698 = vmatpush.msra.mxu1 %v111_v1  ;;  %143 = vmatpush.msra.mxu0 %v111_v1  ;;  %v926_v9 = vld [vmem:[#allocation7 + $0x18] sm:$0xff]  ;;  %v931_v10 = vld [vmem:[#allocation7 + $0x10] sm:$0xff]  ;;  %v935_v11 = vld [vmem:[#allocation7 + $0x8] sm:$0xff] }
  0x16   :  { %677 = vmatmul.msk.f32.vlgmr.msra.gmra.mxu1 %vm117_vm1, %v110_v2  ;;  %676 = vmatmul.msk.f32.vlgmr.msra.gmra.mxu0 %vm117_vm1, %v109_v4  ;;  %v940_v12 = vld [vmem:[#allocation7] sm:$0xff]  ;;  %v945_v13 = vld [vmem:[#allocation8 + $0x18] sm:$0xff]  ;;  %v706_v14 = vld [vmem:[%s1087_s3] ss:$0 sm:$0xff] }
  0x17   :  { %167 = vmatpush.msrb.mxu1 %v897_v3  ;;  %332 = vmatpush.msrb.mxu0 %v897_v3  ;;  %v963_v22 = vld [vmem:[#allocation8 + $0x10] sm:$0xff]  ;;  %v967_v23 = vld [vmem:[#allocation8 + $0x8] sm:$0xff]  ;;  %v971_v24 = vld [vmem:[#allocation8] sm:$0xff] }
  0x18   :  { %195 = vmatpush.msra.mxu2 %v926_v9  ;;  %222 = vmatpush.msra.mxu3 %v945_v13  ;;  %v982_v25 = vld [vmem:[%s1089_s5] ss:$0 sm:$0xff] }
  0x19   :  { %168 = vmatpush.msrb.mxu1 %v902_v5  ;;  %333 = vmatpush.msrb.mxu0 %v902_v5  ;;  %v993_v29 = vld [vmem:[%s1091_s7] ss:$0 sm:$0xff] }
  0x1a   :  { %196 = vmatpush.msra.mxu2 %v931_v10  ;;  %223 = vmatpush.msra.mxu3 %v963_v22 }
  0x1b   :  { %169 = vmatpush.msrb.mxu1 %v909_v6  ;;  %334 = vmatpush.msrb.mxu0 %v909_v6 }
  0x1c   :  { %197 = vmatpush.msra.mxu2 %v935_v11  ;;  %224 = vmatpush.msra.mxu3 %v967_v23 }
  0x1d   :  { %170 = vmatpush.msrb.mxu1 %v916_v7  ;;  %335 = vmatpush.msrb.mxu0 %v916_v7 }
  0x1e   :  { %171 = vmatmul.f32.vlgmr.msrb.gmra.mxu1 %v829_v8  ;;  %198 = vmatpush.msra.mxu2 %v940_v12 }
  0x1f   :  { %248 = vmatpush.msra.mxu1 %v897_v3  ;;  %439 = vmatpush.msra.mxu0 %v926_v9 }
  0x20   :  { %281 = vmatpush.msrb.mxu2 %v926_v9  ;;  %225 = vmatpush.msra.mxu3 %v971_v24 }
  0x21   :  { %249 = vmatpush.msra.mxu1 %v902_v5  ;;  %440 = vmatpush.msra.mxu0 %v931_v10 }
  0x22   :  { %282 = vmatpush.msrb.mxu2 %v931_v10  ;;  %305 = vmatpush.msrb.mxu3 %v945_v13 }
  0x23   :  { %250 = vmatpush.msra.mxu1 %v909_v6  ;;  %441 = vmatpush.msra.mxu0 %v935_v11 }
  0x24   :  { %283 = vmatpush.msrb.mxu2 %v935_v11  ;;  %306 = vmatpush.msrb.mxu3 %v963_v22 }
  0x25   :  { %251 = vmatpush.msra.mxu1 %v916_v7  ;;  %442 = vmatpush.msra.mxu0 %v940_v12 }
  0x26   :  { %284 = vmatpush.msrb.mxu2 %v940_v12  ;;  %307 = vmatpush.msrb.mxu3 %v967_v23 }
  0x27   :  { %361 = vmatpush.msrb.mxu1 %v926_v9 }
  0x28   :  { %308 = vmatpush.msrb.mxu3 %v971_v24 }
  0x29   :  { %362 = vmatpush.msrb.mxu1 %v931_v10 }
  0x2b   :  { %363 = vmatpush.msrb.mxu1 %v935_v11 }
  0x2d   :  { %364 = vmatpush.msrb.mxu1 %v940_v12 }
  0x93   :  { %v148_v15 = vpop.f32.mrf.mxu1  ;;  %v145_v17 = vpop.f32.mrf.mxu0 }
  0x94   :  { %v956_v16 = vadd.f32 %v706_v14, %v148_v15  ;;  %v958_v18 = vadd.f32 %v706_v14, %v145_v17  ;;  %v632_v14 = vld [vmem:[%s1092_s8] sm:$0xff] }
  0x9b   :  { %v172_v19 = vpop.f32.mrf.mxu1 }
  0x9c   :  { %v175_v20 = vadd.f32 %v172_v19, %v958_v18 }
  0x9e   :  { %v176_v21 = vmax.f32 %v175_v20, 0.0 }
  0xa0   :  { %678 = vmatmul.msk.f32.vlgmr.msra.gmra.mxu2 %vm151_vm2, %v176_v21 }
  0xa1   :  { %385 = vmatpush.msra.mxu2 %v945_v13 }
  0xa3   :  { %386 = vmatpush.msra.mxu2 %v963_v22 }
  0xa5   :  { %387 = vmatpush.msra.mxu2 %v967_v23 }
  0xa7   :  { %388 = vmatpush.msra.mxu2 %v971_v24 }
 0x123   :  { %v200_v26 = vpop.f32.mrf.mxu2 }
 0x124   :  { %v201_v27 = vadd.f32 %v982_v25, %v200_v26 }
 0x126   :  { %v203_v28 = vmax.f32 %v201_v27, 0.0 }
 0x128   :  { %679 = vmatmul.msk.f32.vlgmr.msra.gmra.mxu3 %vm151_vm2, %v203_v28 }
 0x129   :  { %410 = vmatpush.msra.mxu3 %v897_v3 }
 0x12b   :  { %411 = vmatpush.msra.mxu3 %v902_v5 }
 0x12d   :  { %412 = vmatpush.msra.mxu3 %v909_v6 }
 0x12f   :  { %413 = vmatpush.msra.mxu3 %v916_v7 }
 0x1ab   :  { %v227_v30 = vpop.f32.mrf.mxu3 }
 0x1ac   :  { %v228_v31 = vadd.f32 %v993_v29, %v227_v30 }
 0x1ae   :  { %709 = vtanh.f32 %v228_v31 }
 0x1b4   :  { %v710_v32 = vpop.eup %709 }
 0x1b5   :  { %232 = vst.msk [vmem:[#allocation2] sm:$0x3] %vm231_vm3, %v710_v32  ;;  %680 = vmatmul.msk.f32.vlgmr.msra.gmra.mxu1 %vm151_vm2, %v710_v32 }
 0x1b6   :  { %463 = vmatpush.msra.mxu1 %v945_v13 }
 0x1b8   :  { %464 = vmatpush.msra.mxu1 %v963_v22 }
 0x1ba   :  { %465 = vmatpush.msra.mxu1 %v967_v23 }
 0x1bc   :  { %466 = vmatpush.msra.mxu1 %v971_v24 }
 0x232   :  { %v253_v33 = vpop.f32.mrf.mxu1 }
 0x233   :  { %v257_v34 = vrot.slane %v253_v33, 6 }
 0x235   :  { %v259_v35 = vsel %vm124_vm0, %v253_v33, %v257_v34 }
 0x236   :  { %v261_v36 = vrot.slane %v259_v35, 6 }
 0x238   :  { %v263_v37 = vadd.f32 %v261_v36, %v958_v18 }
 0x23a   :  { %v264_v38 = vmax.f32 %v263_v37, 0.0 }
 0x23c   :  { %v266_v39 = vrot.slane %v264_v38, 2 }
 0x23e   :  { %681 = vmatmul.msk.f32.vlgmr.msrb.gmra.mxu2 %vm151_vm2, %v266_v39 }
 0x23f   :  { %489 = vmatpush.msrb.mxu2 %v897_v3 }
 0x241   :  { %490 = vmatpush.msrb.mxu2 %v902_v5 }
 0x243   :  { %491 = vmatpush.msrb.mxu2 %v909_v6 }
 0x245   :  { %492 = vmatpush.msrb.mxu2 %v916_v7 }
 0x2c1   :  { %v286_v40 = vpop.f32.mrf.mxu2 }
 0x2c2   :  { %v287_v41 = vadd.f32 %v982_v25, %v286_v40 }
 0x2c4   :  { %v289_v42 = vmax.f32 %v287_v41, 0.0 }
 0x2c6   :  { %682 = vmatmul.msk.f32.vlgmr.msrb.gmra.mxu3 %vm151_vm2, %v289_v42 }
 0x2c7   :  { %518 = vmatpush.msrb.mxu3 %v926_v9 }
 0x2c9   :  { %519 = vmatpush.msrb.mxu3 %v931_v10 }
 0x2cb   :  { %520 = vmatpush.msrb.mxu3 %v935_v11 }
 0x2cd   :  { %521 = vmatpush.msrb.mxu3 %v940_v12 }
 0x349   :  { %v310_v43 = vpop.f32.mrf.mxu3 }
 0x34a   :  { %v311_v44 = vadd.f32 %v993_v29, %v310_v43 }
 0x34c   :  { %711 = vtanh.f32 %v311_v44 }
 0x352   :  { %v712_v45 = vpop.eup %711 }
 0x353   :  { %315 = vst.msk [vmem:[#allocation2 + $0x2] sm:$0xf] %vm314_vm4, %v712_v45  ;;  %v317_v46 = vrot.slane %v712_v45, 2 }
 0x355   :  { %683 = vmatmul.msk.f32.vlgmr.msrb.gmra.mxu0 %vm151_vm2, %v317_v46 }
 0x356   :  { %542 = vmatpush.msrb.mxu0 %v945_v13 }
 0x358   :  { %543 = vmatpush.msrb.mxu0 %v963_v22 }
 0x35a   :  { %544 = vmatpush.msrb.mxu0 %v967_v23 }
 0x35c   :  { %545 = vmatpush.msrb.mxu0 %v971_v24 }
 0x3d2   :  { %v337_v47 = vpop.f32.mrf.mxu0 }
 0x3d3   :  { %v341_v48 = vrot.slane %v337_v47, 2 }
 0x3d5   :  { %v343_v49 = vadd.f32 %v341_v48, %v958_v18 }
 0x3d7   :  { %v344_v50 = vmax.f32 %v343_v49, 0.0 }
 0x3d9   :  { %v346_v51 = vrot.slane %v344_v50, 6 }
 0x3db   :  { %684 = vmatmul.msk.f32.vlgmr.msrb.gmra.mxu1 %vm151_vm2, %v346_v51 }
 0x3dc   :  { %567 = vmatpush.msrb.mxu1 %v897_v3 }
 0x3de   :  { %568 = vmatpush.msrb.mxu1 %v902_v5 }
 0x3e0   :  { %569 = vmatpush.msrb.mxu1 %v909_v6 }
 0x3e2   :  { %570 = vmatpush.msrb.mxu1 %v916_v7 }
 0x458   :  { %v366_v52 = vpop.f32.mrf.mxu1 }
 0x459   :  { %v367_v53 = vadd.f32 %v982_v25, %v366_v52 }
 0x45b   :  { %v369_v54 = vmax.f32 %v367_v53, 0.0 }
 0x45d   :  { %685 = vmatmul.msk.f32.vlgmr.msra.gmra.mxu2 %vm151_vm2, %v369_v54 }
 0x45e   :  { %596 = vmatpush.msra.mxu2 %v926_v9 }
 0x460   :  { %597 = vmatpush.msra.mxu2 %v931_v10 }
 0x462   :  { %598 = vmatpush.msra.mxu2 %v935_v11  ;;  %v635_v11 = vld [vmem:[%s1092_s8 + $0x18] sm:$0xff] }
 0x464   :  { %599 = vmatpush.msra.mxu2 %v940_v12  ;;  %v634_v12 = vld [vmem:[%s1092_s8 + $0x10] sm:$0xff] }
 0x4e0   :  { %v390_v55 = vpop.f32.mrf.mxu2 }
 0x4e1   :  { %v391_v56 = vadd.f32 %v993_v29, %v390_v55 }
 0x4e3   :  { %713 = vtanh.f32 %v391_v56 }
 0x4e9   :  { %v714_v57 = vpop.eup %713 }
 0x4ea   :  { %394 = vst.msk [vmem:[#allocation2 + $0x6] sm:$0x3] %vm231_vm3, %v714_v57  ;;  %686 = vmatmul.msk.f32.vlgmr.msra.gmra.mxu3 %vm151_vm2, %v714_v57 }
 0x4eb   :  { %620 = vmatpush.msra.mxu3 %v945_v13  ;;  %v633_v13 = vld [vmem:[%s1092_s8 + $0x8] sm:$0xff] }
 0x4ed   :  { %621 = vmatpush.msra.mxu3 %v963_v22 }
 0x4ef   :  { %622 = vmatpush.msra.mxu3 %v967_v23 }
 0x4f1   :  { %623 = vmatpush.msra.mxu3 %v971_v24  ;;  %v630_v19 = vld [vmem:[#allocation2] sm:$0xff] }
 0x56d   :  { %v415_v58 = vpop.f32.mrf.mxu3 }
 0x56e   :  { %v419_v59 = vrot.slane %v415_v58, 6 }
 0x570   :  { %v421_v60 = vsel %vm124_vm0, %v415_v58, %v419_v59 }
 0x571   :  { %v422_v61 = vadd.f32 %v421_v60, %v956_v16 }
 0x573   :  { %v423_v62 = vmax.f32 %v422_v61, 0.0 }
 0x575   :  { %687 = vmatmul.msk.f32.vlgmr.msra.gmra.mxu0 %vm151_vm2, %v423_v62 }
 0x576   :  { %654 = vmatpush.msra.mxu0 %v635_v11 }
 0x578   :  { %655 = vmatpush.msra.mxu0 %v634_v12 }
 0x57a   :  { %656 = vmatpush.msra.mxu0 %v633_v13 }
 0x57c   :  { %657 = vmatpush.msra.mxu0 %v632_v14 }
 0x5f2   :  { %v444_v63 = vpop.f32.mrf.mxu0 }
 0x5f3   :  { %v445_v0 = vadd.f32 %v982_v25, %v444_v63 }
 0x5f5   :  { %v447_v1 = vmax.f32 %v445_v0, 0.0 }
 0x5f7   :  { %688 = vmatmul.msk.f32.vlgmr.msra.gmra.mxu1 %vm151_vm2, %v447_v1 }
 0x674   :  { %v468_v2 = vpop.f32.mrf.mxu1 }
 0x675   :  { %v469_v3 = vadd.f32 %v993_v29, %v468_v2 }
 0x677   :  { %715 = vtanh.f32 %v469_v3 }
 0x67d   :  { %v716_v4 = vpop.eup %715 }
 0x67e   :  { %472 = vst.msk [vmem:[#allocation2 + $0x8] sm:$0xf] %vm314_vm4, %v716_v4  ;;  %v474_v5 = vrot.slane %v716_v4, 2 }
 0x680   :  { %689 = vmatmul.msk.f32.vlgmr.msrb.gmra.mxu2 %vm151_vm2, %v474_v5 }
 0x703   :  { %v494_v6 = vpop.f32.mrf.mxu2 }
 0x704   :  { %v498_v7 = vrot.slane %v494_v6, 4 }
 0x706   :  { %v500_v8 = vadd.f32 %v498_v7, %v956_v16 }
 0x708   :  { %v501_v9 = vmax.f32 %v500_v8, 0.0 }
 0x70a   :  { %v503_v10 = vrot.slane %v501_v9, 4 }
 0x70c   :  { %690 = vmatmul.msk.f32.vlgmr.msrb.gmra.mxu3 %vm151_vm2, %v503_v10 }
 0x78f   :  { %v523_v15 = vpop.f32.mrf.mxu3 }
 0x790   :  { %v524_v17 = vadd.f32 %v982_v25, %v523_v15 }
 0x792   :  { %v526_v18 = vmax.f32 %v524_v17, 0.0 }
 0x794   :  { %691 = vmatmul.msk.f32.vlgmr.msrb.gmra.mxu0 %vm151_vm2, %v526_v18 }
 0x79c   :  { %695 = vmatmul.msk.f32.vlgmr.msra.gmra.mxu0 %vm151_vm2, %v630_v19 }
 0x811   :  { %v547_v20 = vpop.f32.mrf.mxu0 }
 0x812   :  { %v548_v21 = vadd.f32 %v993_v29, %v547_v20 }
 0x814   :  { %717 = vtanh.f32 %v548_v21 }
 0x819   :  { %v659_v22 = vpop.f32.mrf.mxu0 }
 0x81a   :  { %v718_v23 = vpop.eup %717  ;;  %666 = vst.msk [vmem:[%s1093_s9] sm:$0xff] %vm665_vm5, %v659_v22 }
 0x81b   :  { %551 = vst.msk [vmem:[#allocation2 + $0xc] sm:$0x3] %vm231_vm3, %v718_v23  ;;  %692 = vmatmul.msk.f32.vlgmr.msrb.gmra.mxu1 %vm151_vm2, %v718_v23 }
 0x898   :  { %v572_v24 = vpop.f32.mrf.mxu1 }
 0x899   :  { %v576_v26 = vrot.slane %v572_v24, 2 }
 0x89b   :  { %v578_v27 = vadd.f32 %v576_v26, %v956_v16 }
 0x89d   :  { %v579_v28 = vmax.f32 %v578_v27, 0.0 }
 0x89f   :  { %v581_v30 = vrot.slane %v579_v28, 6 }
 0x8a1   :  { %693 = vmatmul.msk.f32.vlgmr.msra.gmra.mxu2 %vm151_vm2, %v581_v30 }
 0x924   :  { %v601_v31 = vpop.f32.mrf.mxu2 }
 0x925   :  { %v602_v32 = vadd.f32 %v982_v25, %v601_v31 }
 0x927   :  { %v604_v33 = vmax.f32 %v602_v32, 0.0 }
 0x929   :  { %694 = vmatmul.msk.f32.vlgmr.msra.gmra.mxu3 %vm151_vm2, %v604_v33 }
 0x9ac   :  { %v625_v34 = vpop.f32.mrf.mxu3 }
 0x9ad   :  { %v626_v35 = vadd.f32 %v993_v29, %v625_v34 }
 0x9af   :  { %719 = vtanh.f32 %v626_v35 }
 0x9b5   :  { %v720_v36 = vpop.eup %719 }
 0x9b6   :  { %629 = vst.msk [vmem:[#allocation2 + $0xe] sm:$0x3] %vm231_vm3, %v720_v36 }
 0x9bd   :  { %v631_v37 = vld [vmem:[#allocation2 + $0x8] sm:$0xff] }
 0x9be   :  { %696 = vmatmul.msk.f32.gmra.mxu0 %vm151_vm2, %v631_v37 }
 0xa3b   :  { %v662_v16 = vpop.f32.mrf.mxu0 }
 0xa3c   :  { %667 = vst.msk [vmem:[%s1093_s9 + $0x8] sm:$0xff] %vm665_vm5, %v662_v16 }
 0xa3d   :  { %672 = vsyncpa [#allocation4], 1 }
 0xa3e   :  { %673 = vsyncpa [#allocation6], 1 }
 0xa3f   :  { %674 = vsyncpa [#allocation9], 1 }

</bundles_post_ra>
